<compile_context>
chip_gen: v6e
topology: v6e:2x2x1
jax: 0.10.0
libtpu: 0.0.40
codegen_flags: <defaults>
</compile_context>

<pallas_src>
import jax
import jax.numpy as jnp
from jax.experimental import pallas as pl
from jax.experimental.pallas import tpu as pltpu


def _make_star_relu_kernel(compute_dtype):
    def kernel(scale_ref, bias_ref, x_ref, o_ref):
        # scale_ref / bias_ref are shape-(1,) float32 scalars in SMEM.
        s = scale_ref[0].astype(compute_dtype)
        b = bias_ref[0].astype(compute_dtype)
        x = x_ref[...].astype(compute_dtype)
        r = jnp.maximum(x, jnp.zeros((), compute_dtype))
        o_ref[...] = (s * (r * r) + b).astype(o_ref.dtype)
    return kernel


def _sublane_multiple(dtype):
    # f32 -> 8, bf16/f16 -> 16, int8/fp8 -> 32 (packed sublanes).
    itemsize = jnp.dtype(dtype).itemsize
    return max(8, 32 // itemsize)


def _native_bf16_ok():
    """True if this chip has bf16 VPU support (v6e / v7x); False on v5e & older."""
    try:
        kind = jax.devices()[0].device_kind.lower()
    except Exception:
        return False
    for old in ("v2", "v3", "v4", "v5"):
        if old in kind:
            return False
    return True


def star_relu(x, scale, bias, *, target_block_bytes=4 * 1024 * 1024):
    """StarReLU forward. x: any shape; scale, bias: shape (1,) f32 params."""
    orig_shape = x.shape
    orig_dtype = x.dtype
    n = x.size
    itemsize = jnp.dtype(orig_dtype).itemsize
    sub = _sublane_multiple(orig_dtype)

    # Compute dtype: native bf16 on v6e/v7x, f32 everywhere else.
    if orig_dtype == jnp.bfloat16 and _native_bf16_ok():
        compute_dtype = jnp.bfloat16
    else:
        compute_dtype = jnp.float32

    # ---- choose a lane-dense slab width that divides n (no padding copy) ---
    # Prefer the widest width that also keeps rows >= sublane multiple so the
    # slab fills vregs in the sublane dimension.
    candidates = (8192, 4096, 2048, 1024, 512, 256, 128)
    divisors = [c for c in candidates if n % c == 0]
    lanes = None
    for c in divisors:
        if n // c >= sub:
            lanes = c
            break
    if lanes is None and divisors:
        lanes = divisors[0]          # tiny input: take the widest divisor

    x_flat = jnp.reshape(x, (-1,))
    pad = 0
    if lanes is None:
        # Rare fallback: n has no 128-multiple divisor.  Pad a small (<128
        # element) tail; sliced off after the kernel.
        lanes = 128
        rows = pl.cdiv(n, lanes)
        pad = rows * lanes - n
        x_flat = jnp.pad(x_flat, (0, pad))
    rows = x_flat.size // lanes
    x2d = jnp.reshape(x_flat, (rows, lanes))

    # ---- pick the row-block size: ~target_block_bytes per tile -------------
    block_rows = max(sub, (target_block_bytes // (lanes * itemsize)) // sub * sub)
    if block_rows >= rows:
        if rows >= 2 * sub:
            # Keep at least 2 grid steps so megacore sharding (v7x) and
            # fetch/compute/writeback overlap stay alive.
            block_rows = pl.cdiv(pl.cdiv(rows, 2), sub) * sub
        else:
            block_rows = rows        # full-extent block (tiny input)
    grid = (pl.cdiv(rows, block_rows),)

    block_bytes = block_rows * lanes * itemsize
    vmem_limit = int(min(48 * 1024 * 1024, max(32 * 1024 * 1024, 6 * block_bytes)))

    out2d = pl.pallas_call(
        _make_star_relu_kernel(compute_dtype),
        out_shape=jax.ShapeDtypeStruct((rows, lanes), orig_dtype),
        grid_spec=pltpu.PrefetchScalarGridSpec(
            num_scalar_prefetch=0,
            grid=grid,
            in_specs=[
                pl.BlockSpec(memory_space=pltpu.SMEM),               # scale (1,) f32
                pl.BlockSpec(memory_space=pltpu.SMEM),               # bias  (1,) f32
                pl.BlockSpec((block_rows, lanes), lambda i: (i, 0)),
            ],
            out_specs=pl.BlockSpec((block_rows, lanes), lambda i: (i, 0)),
        ),
        compiler_params=pltpu.CompilerParams(
            dimension_semantics=("parallel",),          # shards across v7x's 2 TCs
            vmem_limit_bytes=vmem_limit,
        ),
    )(scale.astype(jnp.float32), bias.astype(jnp.float32), x2d)

    if pad == 0:
        # Common case: pure metadata reshape, no extra HBM pass.
        return jnp.reshape(out2d, orig_shape)
    out_flat = jnp.reshape(out2d, (-1,))[:n]
    return jnp.reshape(out_flat, orig_shape)


if __name__ == "__main__":
    key = jax.random.PRNGKey(0)

    # Deterministic parameter init, matching StarReLU.__init__ defaults:
    # scale = 1.0 * ones(1), bias = 0.0 * ones(1)  (float32, like PyTorch)
    scale = jnp.ones((1,), dtype=jnp.float32) * 1.0
    bias = jnp.ones((1,), dtype=jnp.float32) * 0.0

    # --- main check: NCHW f32 input, consistent with the PyTorch module -----
    x = jax.random.normal(key, (2, 4, 16, 16), dtype=jnp.float32)
    out = jax.block_until_ready(star_relu(x, scale, bias))
    ref = scale * jnp.maximum(x, 0.0) ** 2 + bias
    assert out.shape == x.shape and out.dtype == x.dtype
    assert jnp.allclose(out, ref, atol=1e-6, rtol=1e-6)

    # --- bf16 path (native compute on v6e/v7x, f32 upcast on v5e) -----------
    xb = jax.random.normal(jax.random.PRNGKey(1), (2, 8, 16, 16), dtype=jnp.bfloat16)
    outb = jax.block_until_ready(star_relu(xb, scale, bias))
    refb = jnp.maximum(xb.astype(jnp.float32), 0.0) ** 2
    assert outb.shape == xb.shape and outb.dtype == xb.dtype
    assert jnp.allclose(outb.astype(jnp.float32), refb, atol=2e-2, rtol=2e-2)

    # --- rare tail-pad path: n not a multiple of 128 -------------------------
    xt = jax.random.normal(jax.random.PRNGKey(2), (3, 5, 7), dtype=jnp.float32)
    outt = jax.block_until_ready(star_relu(xt, scale, bias))
    reft = scale * jnp.maximum(xt, 0.0) ** 2 + bias
    assert outt.shape == xt.shape and jnp.allclose(outt, reft, atol=1e-6, rtol=1e-6)

    print("KERNEL_OK")
</pallas_src>

<mosaic_0001>
module attributes {stable_mosaic.version = 11 : i64} {
  func.func @kernel(%arg0: i32, %arg1: memref<1xf32, #tpu.memory_space<smem>>, %arg2: memref<1xf32, #tpu.memory_space<smem>>, %arg3: memref<8x256xf32, #tpu.memory_space<vmem>>, %arg4: memref<8x256xf32, #tpu.memory_space<vmem>>) attributes {dimension_semantics = [#tpu.dimension_semantics<parallel>], iteration_bounds = array<i64: 1>, scalar_prefetch = 0 : i64, scratch_operands = 0 : i64, tpu.core_type = #tpu.core_type<tc>, window_params = [{transform_indices = @transform_0, window_bounds = array<i64: 1>}, {transform_indices = @transform_1, window_bounds = array<i64: 1>}, {transform_indices = @transform_2, window_bounds = array<i64: 8, 256>}, {transform_indices = @transform_3, window_bounds = array<i64: 8, 256>}]} {
    %c0 = arith.constant 0 : index
    %0 = memref.load %arg1[%c0] : memref<1xf32, #tpu.memory_space<smem>>
    %c0_0 = arith.constant 0 : index
    %1 = memref.load %arg2[%c0_0] : memref<1xf32, #tpu.memory_space<smem>>
    %c0_1 = arith.constant 0 : index
    %c0_2 = arith.constant 0 : index
    %2 = vector.load %arg3[%c0_1, %c0_2] : memref<8x256xf32, #tpu.memory_space<vmem>>, vector<8x256xf32>
    %cst = arith.constant 0.000000e+00 : f32
    %3 = vector.broadcast %cst : f32 to vector<8x256xf32>
    %4 = arith.maximumf %2, %3 : vector<8x256xf32>
    %5 = arith.mulf %4, %4 : vector<8x256xf32>
    %6 = vector.broadcast %0 : f32 to vector<8x256xf32>
    %7 = arith.mulf %6, %5 : vector<8x256xf32>
    %8 = vector.broadcast %1 : f32 to vector<8x256xf32>
    %9 = arith.addf %7, %8 : vector<8x256xf32>
    %c0_3 = arith.constant 0 : index
    %c0_4 = arith.constant 0 : index
    %10 = vector.load %arg4[%c0_3, %c0_4] : memref<8x256xf32, #tpu.memory_space<vmem>>, vector<8x256xf32>
    tpu.vector_store %arg4[%c0_3, %c0_4], %9 {strides = array<i32>} : memref<8x256xf32, #tpu.memory_space<vmem>>, vector<8x256xf32>,
    return
  }
  func.func @transform_0(%arg0: i32) -> i32 {
    %c0_i32 = arith.constant 0 : i32
    %c0_i32_0 = arith.constant 0 : i32
    return %c0_i32 : i32
  }
  func.func @transform_1(%arg0: i32) -> i32 {
    %c0_i32 = arith.constant 0 : i32
    %c0_i32_0 = arith.constant 0 : i32
    return %c0_i32 : i32
  }
  func.func @transform_2(%arg0: i32) -> (i32, i32) {
    %c0_i32 = arith.constant 0 : i32
    %c0_i32_0 = arith.constant 0 : i32
    return %arg0, %c0_i32 : i32, i32
  }
  func.func @transform_3(%arg0: i32) -> (i32, i32) {
    %c0_i32 = arith.constant 0 : i32
    %c0_i32_0 = arith.constant 0 : i32
    return %arg0, %c0_i32 : i32, i32
  }
}

</mosaic_0001>

<bundles_post_ra>
// kernel: tpu_custom_call.1
= control target key start
LH: loop header
LB: loop body
LE: loop exit
PB: predicated region body
PF: predicated region fallthrough
CT: control target
= control target key end

     0   :  { %10 = vsyncpa [#allocation5], 0  ;;  %s140_s0 = inlined_call_operand.<no memory space> [shape: f32[1], index: 0, kind: input, shape index: {}]   ;;  %s141_s1 = inlined_call_operand.<no memory space> [shape: f32[1], index: 1, kind: input, shape index: {}]   ;;  %s142_s2 = inlined_call_operand.hbm [shape: f32[8,256], index: 2, kind: input, shape index: {}]   ;;  %s143_s3 = inlined_call_operand.hbm [shape: f32[8,256], index: 3, kind: output, shape index: {}]  }
   0x1   :  { %11 = vsyncpa [#allocation6], 0  ;;  %s106_s12 = smov [#allocation4]  }
   0x2   :  { %s22_s13 = sshll.u32 %s106_s12, 4  ;;  %s23_s13 = int_to_ptr.vmem [resolvable:$true] %s22_s13 }
   0x3   :  { %s70_s14 = scalar_lea.vmem %s23_s13, 256  ;;  %p75_p1 = scmp.lt.s32.totalorder %s23_s13, %s23_s13 }
   0x4   :  { %p71_p0 = scmp.ne.s32.totalorder %s23_s13, %s70_s14  ;;  %p76_p2 = scmp.lt.s32.totalorder %s70_s14, %s70_s14 }
   0x6   :  { %p77_p3 = por %p76_p2, %p75_p1 }
   0x8   :  { %p78_p4 = pnand %p77_p3, %p71_p0 }
   0xa   :  { %81 = shalt.err (!%p78_p4)
}
   0xb   :  { %25 = dma.hbm_to_vmem [thread:$0]  %s142_s2, 256, %s23_s13, [#allocation5]  }
   0xc   :  { %102 = dma.done.wait [#allocation5], 256  }
   0xd   :  { %103 = vsyncadd [#allocation5], 4294967040  ;;  %v31_v0 = vld [vmem:[#allocation4] sm:$0xff]  ;;  %v32_v1 = vld [vmem:[#allocation4 + $0x8] sm:$0xff]  ;;  %v37_v4 = vstv %s140_s0  ;;  %v40_v7 = vstv %s141_s1  ;;  %s107_s21 = smov [#allocation7]  }
   0xe   :  { %v33_v2 = vmax.f32 %v31_v0, 0.0  ;;  %v34_v3 = vmax.f32 %v32_v1, 0.0  ;;  %s51_s22 = sshll.u32 %s107_s21, 4  ;;  %s52_s22 = int_to_ptr.vmem [resolvable:$true] %s51_s22 }
   0xf   :  { %s82_s2 = scalar_lea.vmem %s52_s22, 256  ;;  %p87_p6 = scmp.lt.s32.totalorder %s52_s22, %s52_s22 }
  0x10   :  { %v35_v5 = vmul.f32 %v33_v2, %v33_v2  ;;  %v36_v6 = vmul.f32 %v34_v3, %v34_v3  ;;  %p83_p5 = scmp.ne.s32.totalorder %s52_s22, %s82_s2  ;;  %p88_p7 = scmp.lt.s32.totalorder %s82_s2, %s82_s2 }
  0x12   :  { %v38_v8 = vmul.f32 %v37_v4, %v35_v5  ;;  %v39_v9 = vmul.f32 %v37_v4, %v36_v6  ;;  %p89_p8 = por %p88_p7, %p87_p6 }
  0x14   :  { %v41_v10 = vadd.f32 %v40_v7, %v38_v8  ;;  %v42_v11 = vadd.f32 %v40_v7, %v39_v9  ;;  %p90_p9 = pnand %p89_p8, %p83_p5 }
  0x16   :  { %43 = vst [vmem:[#allocation7] sm:$0xff] %v41_v10  ;;  %44 = vst [vmem:[#allocation7 + $0x8] sm:$0xff] %v42_v11 }
  0x17   :  { %93 = shalt.err (!%p90_p9)
}
  0x18   :  { %54 = dma.vmem_to_hbm [thread:$0]  %s52_s22, 256, %s143_s3, [#allocation6]  }
  0x19   :  { %104 = dma.done.wait [#allocation6], 256  }
  0x1a   :  { %105 = vsyncadd [#allocation6], 4294967040 }
  0x1b   :  { %58 = vsyncpa [#allocation5], 1 }
  0x1c   :  { %59 = vsyncpa [#allocation6], 1 }

</bundles_post_ra>
